<compile_context>
chip_gen: v5e
topology: v5e:2x2
jax: 0.10.0
libtpu: 0.0.40
codegen_flags: <defaults>
</compile_context>

<pallas_src>
import jax
import jax.numpy as jnp
from jax.experimental import pallas as pl
from jax.experimental.pallas import tpu as pltpu


def wlp_kernel(w_ref, hs_ref, mask_ref, out_ref, acc_ref):
    """Grid step (b, d, l): accumulate layer l's masked sequence-sum for one (b, d) tile.

    w_ref    : (L,) f32 SMEM             - layer weights, pre-normalized (w / sum(w))
    hs_ref   : (1, Bb, S, Dc) VMEM       - current layer's hidden-state tile (native dtype)
    mask_ref : (Bb, S, 1) f32 VMEM       - attention mask staged in hs layout (S on sublanes)
    out_ref  : (Bb, Dc) f32 VMEM         - pooled logits tile
    acc_ref  : (Bb, Dc) f32 VMEM scratch - running sum over layers & sequence
    """
    l = pl.program_id(2)
    num_l = pl.num_programs(2)

    @pl.when(l == 0)
    def _():
        acc_ref[...] = jnp.zeros_like(acc_ref)

    w_l = w_ref[l]                               # scalar from SMEM (already / sum(w))
    hs = hs_ref[0].astype(jnp.float32)           # upcast in VMEM (v5e VPU has no bf16)
    mask3 = mask_ref[...]                        # (Bb, S, 1): lane-broadcast is cheap

    # weight applied AFTER the S-reduction: (Bb, Dc) scalar multiply, not (Bb, S, Dc)
    acc_ref[...] += w_l * jnp.sum(mask3 * hs, axis=1)

    @pl.when(l == num_l - 1)
    def _():
        mask_sum = jnp.sum(mask_ref[...], axis=1)        # (Bb, 1)
        denom = jnp.maximum(mask_sum, 1e-9)              # guard all-padding rows
        # exact divide (epilogue runs once per tile; approx EUP recip would cost accuracy)
        out_ref[...] = (acc_ref[...] / denom).astype(out_ref.dtype)


def _divisors_desc(n):
    return [d for d in range(n, 0, -1) if n % d == 0]


def _pick_tiles(B, S, D, hs_itemsize, vmem_budget):
    """Pick (b_blk, d_chunk) that fits the VMEM budget and keeps blocks layout-legal."""

    def tile_bytes(b_blk, d_chunk):
        hs_b = 2 * b_blk * S * d_chunk * hs_itemsize     # double-buffered hs stream
        mask_b = 2 * b_blk * S * 4                       # (Bb, S, 1) f32
        acc_b = b_blk * d_chunk * 4                      # accumulator scratch
        out_b = 2 * b_blk * d_chunk * 4                  # f32 output tile
        return hs_b + mask_b + acc_b + out_b

    # b_blk must be B (full) or a multiple of 8 so the (b_blk, d_chunk) output block
    # keeps the (8, 128) tiling rule; d_chunk must be D (full) or a multiple of 128.
    b_cands = [c for c in _divisors_desc(B) if c == B or c % 8 == 0]
    d_cands = [D] + [c for c in _divisors_desc(D) if c % 128 == 0 and c != D]

    b_blk, d_chunk = B, D
    # 1. Fit the budget: shrink B first (keeps every DMA row fully D-contiguous),
    #    only then fall back to 128-multiple D chunks.
    while tile_bytes(b_blk, d_chunk) > vmem_budget:
        smaller_b = [c for c in b_cands if c < b_blk]
        if smaller_b:
            b_blk = smaller_b[0]
            continue
        smaller_d = [c for c in d_cands if c < d_chunk]
        if smaller_d:
            d_chunk = smaller_d[0]
            continue
        break  # smallest legal tile; take it

    # 2. Megacore (v7x has 2 TensorCores): ensure the parallel axes have >= 2 blocks.
    if (B // b_blk) * (D // d_chunk) < 2:
        smaller_b = [c for c in b_cands if c < b_blk]
        smaller_d = [c for c in d_cands if c < d_chunk]
        if smaller_b and tile_bytes(smaller_b[0], d_chunk) <= vmem_budget:
            b_blk = smaller_b[0]
        elif smaller_d:
            d_chunk = smaller_d[0]

    return b_blk, d_chunk


def weighted_layer_pooling(hidden_states, attention_mask, layer_weights):
    """hidden_states: (L, B, S, D) float (any dtype, not upcast in the wrapper),
    attention_mask: (B, S), layer_weights: (L,). Returns (B, D) float32."""
    L, B, S, D = hidden_states.shape

    # Normalize layer weights once: drops the wsum scalar path from the kernel.
    w = layer_weights.astype(jnp.float32)
    w_norm = w / jnp.sum(w)

    # Mask staged once in the hidden-state layout (S on sublanes, broadcast along lanes).
    mask3 = attention_mask.astype(jnp.float32)[..., None]            # (B, S, 1)

    hs_itemsize = jnp.dtype(hidden_states.dtype).itemsize

    # VMEM budget: ~70% of per-core capacity, capped at 96 MiB.
    # v7x: 64 MiB/TC -> ~45 MiB; v5e/v6e: 128 MiB -> ~90 MiB.
    try:
        vmem_cap = int(pltpu.get_tpu_info().vmem_capacity_bytes)
    except Exception:
        vmem_cap = 64 * 1024 * 1024   # conservative (v7x per-TC) fallback
    vmem_budget = min(int(vmem_cap * 0.70), 96 * 1024 * 1024)

    b_blk, d_chunk = _pick_tiles(B, S, D, hs_itemsize, vmem_budget)
    grid = (B // b_blk, D // d_chunk, L)

    smem = pl.BlockSpec(memory_space=pltpu.MemorySpace.SMEM)

    cost = pl.CostEstimate(
        flops=3 * L * B * S * D,
        transcendentals=0,
        bytes_accessed=L * B * S * D * hs_itemsize + B * S * 4 + B * D * 4,
    )

    return pl.pallas_call(
        wlp_kernel,
        out_shape=jax.ShapeDtypeStruct((B, D), jnp.float32),
        grid=grid,
        in_specs=[
            smem,                                                               # layer weights
            pl.BlockSpec((1, b_blk, S, d_chunk), lambda b, d, l: (l, b, 0, d)),  # stream layers
            pl.BlockSpec((b_blk, S, 1), lambda b, d, l: (b, 0, 0)),              # layer-invariant mask
        ],
        out_specs=pl.BlockSpec((b_blk, d_chunk), lambda b, d, l: (b, d)),
        scratch_shapes=[pltpu.VMEM((b_blk, d_chunk), jnp.float32)],
        compiler_params=pltpu.CompilerParams(
            dimension_semantics=("parallel", "parallel", "arbitrary"),
            vmem_limit_bytes=vmem_budget,
        ),
        cost_estimate=cost,
    )(w_norm, hidden_states, mask3)


def reference_forward(hidden_states, attention_mask, layer_weights):
    """Pure-JAX mirror of the PyTorch forward (f32 math, like PyTorch promotion)."""
    w = layer_weights.astype(jnp.float32)
    hs = hidden_states.astype(jnp.float32)
    x = jnp.sum(hs * w[:, None, None, None], axis=0) / jnp.sum(w)
    mask = attention_mask.astype(jnp.float32)[..., None]              # (B, S, 1)
    mask_sum = jnp.sum(mask, axis=1)                                  # (B, 1)
    return jnp.sum(x * mask, axis=1) / mask_sum                       # (B, D)


if __name__ == "__main__":
    NUM_LAYERS, BATCH, SEQ, HIDDEN = 4, 2, 8, 128

    key = jax.random.PRNGKey(0)
    k_hs, k_w = jax.random.split(key)

    hidden_states = jax.random.normal(
        k_hs, (NUM_LAYERS, BATCH, SEQ, HIDDEN), jnp.float32)
    # module init is all-ones weights; use non-trivial positive weights for a real test
    layer_weights = jax.random.uniform(k_w, (NUM_LAYERS,), jnp.float32, 0.5, 1.5)
    # valid lengths 8 and 5
    lengths = jnp.array([SEQ, 5], jnp.int32)
    attention_mask = (jnp.arange(SEQ)[None, :] < lengths[:, None]).astype(jnp.int32)

    # float32 path
    logits = jax.block_until_ready(
        weighted_layer_pooling(hidden_states, attention_mask, layer_weights))
    ref = reference_forward(hidden_states, attention_mask, layer_weights)
    assert logits.shape == (BATCH, HIDDEN)
    max_err = float(jnp.max(jnp.abs(logits - ref)))
    assert jnp.allclose(logits, ref, atol=1e-4, rtol=1e-4), f"f32 max abs err {max_err}"

    # bf16 path: hidden states stay bf16 in HBM, upcast happens inside the kernel
    hs_bf16 = hidden_states.astype(jnp.bfloat16)
    logits_bf = jax.block_until_ready(
        weighted_layer_pooling(hs_bf16, attention_mask, layer_weights))
    ref_bf = reference_forward(hs_bf16, attention_mask, layer_weights)
    assert logits_bf.dtype == jnp.float32
    max_err_bf = float(jnp.max(jnp.abs(logits_bf - ref_bf)))
    assert jnp.allclose(logits_bf, ref_bf, atol=2e-3, rtol=2e-3), f"bf16 max abs err {max_err_bf}"

    print("KERNEL_OK")
</pallas_src>

<mosaic_0001>
module attributes {stable_mosaic.version = 11 : i64} {
  func.func @wlp_kernel(%arg0: i32, %arg1: i32, %arg2: i32, %arg3: memref<4xf32, #tpu.memory_space<smem>>, %arg4: memref<1x2x8x128xf32, #tpu.memory_space<vmem>>, %arg5: memref<2x8x1xf32, #tpu.memory_space<vmem>>, %arg6: memref<2x128xf32, #tpu.memory_space<vmem>>, %arg7: memref<2x128xf32, #tpu.memory_space<vmem>>) attributes {dimension_semantics = [#tpu.dimension_semantics<parallel>, #tpu.dimension_semantics<parallel>, #tpu.dimension_semantics<arbitrary>], iteration_bounds = array<i64: 1, 1, 4>, scalar_prefetch = 0 : i64, scratch_operands = 1 : i64, tpu.core_type = #tpu.core_type<tc>, window_params = [{transform_indices = @transform_0, window_bounds = array<i64: 4>}, {transform_indices = @transform_1, window_bounds = array<i64: 1, 2, 8, 128>}, {transform_indices = @transform_2, window_bounds = array<i64: 2, 8, 1>}, {transform_indices = @transform_3, window_bounds = array<i64: 2, 128>}]} {
    %c0_i32 = arith.constant 0 : i32
    %0 = arith.cmpi eq, %arg2, %c0_i32 : i32
    %1 = arith.extui %0 : i1 to i32
    %c0_i32_0 = arith.constant 0 : i32
    %2 = arith.cmpi ne, %1, %c0_i32_0 : i32
    scf.if %2 {
      %cst_12 = arith.constant 0.000000e+00 : f32
      %19 = vector.broadcast %cst_12 : f32 to vector<2x128xf32>
      %c0_13 = arith.constant 0 : index
      %c0_14 = arith.constant 0 : index
      %20 = vector.load %arg7[%c0_13, %c0_14] : memref<2x128xf32, #tpu.memory_space<vmem>>, vector<2x128xf32>
      tpu.vector_store %arg7[%c0_13, %c0_14], %19 {strides = array<i32>} : memref<2x128xf32, #tpu.memory_space<vmem>>, vector<2x128xf32>,
    } else {
    }
    %3 = arith.index_cast %arg2 : i32 to index
    %4 = memref.load %arg3[%3] : memref<4xf32, #tpu.memory_space<smem>>
    %c0 = arith.constant 0 : index
    %c0_1 = arith.constant 0 : index
    %c0_2 = arith.constant 0 : index
    %c0_3 = arith.constant 0 : index
    %5 = vector.load %arg4[%c0, %c0_1, %c0_2, %c0_3] : memref<1x2x8x128xf32, #tpu.memory_space<vmem>>, vector<1x2x8x128xf32>
    %6 = vector.shape_cast %5 : vector<1x2x8x128xf32> to vector<2x8x128xf32>
    %c0_4 = arith.constant 0 : index
    %c0_5 = arith.constant 0 : index
    %c0_6 = arith.constant 0 : index
    %7 = vector.load %arg5[%c0_4, %c0_5, %c0_6] : memref<2x8x1xf32, #tpu.memory_space<vmem>>, vector<2x8x1xf32>
    %c0_7 = arith.constant 0 : index
    %c0_8 = arith.constant 0 : index
    %8 = vector.load %arg7[%c0_7, %c0_8] : memref<2x128xf32, #tpu.memory_space<vmem>>, vector<2x128xf32>
    %9 = vector.broadcast %7 : vector<2x8x1xf32> to vector<2x8x128xf32>
    %10 = arith.mulf %9, %6 : vector<2x8x128xf32>
    %cst = arith.constant dense<0.000000e+00> : vector<2x128xf32>
    %11 = vector.multi_reduction <add>, %10, %cst [1] : vector<2x8x128xf32> to vector<2x128xf32>
    %12 = vector.broadcast %4 : f32 to vector<2x128xf32>
    %13 = arith.mulf %12, %11 : vector<2x128xf32>
    %14 = arith.addf %8, %13 : vector<2x128xf32>
    %c0_9 = arith.constant 0 : index
    %c0_10 = arith.constant 0 : index
    %15 = vector.load %arg7[%c0_9, %c0_10] : memref<2x128xf32, #tpu.memory_space<vmem>>, vector<2x128xf32>
    tpu.vector_store %arg7[%c0_9, %c0_10], %14 {strides = array<i32>} : memref<2x128xf32, #tpu.memory_space<vmem>>, vector<2x128xf32>,
    %c3_i32 = arith.constant 3 : i32
    %16 = arith.cmpi eq, %arg2, %c3_i32 : i32
    %17 = arith.extui %16 : i1 to i32
    %c0_i32_11 = arith.constant 0 : i32
    %18 = arith.cmpi ne, %17, %c0_i32_11 : i32
    scf.if %18 {
      %c0_12 = arith.constant 0 : index
      %c0_13 = arith.constant 0 : index
      %c0_14 = arith.constant 0 : index
      %19 = vector.load %arg5[%c0_12, %c0_13, %c0_14] : memref<2x8x1xf32, #tpu.memory_space<vmem>>, vector<2x8x1xf32>
      %cst_15 = arith.constant dense<0.000000e+00> : vector<2x1xf32>
      %20 = vector.multi_reduction <add>, %19, %cst_15 [1] : vector<2x8x1xf32> to vector<2x1xf32>
      %cst_16 = arith.constant 9.99999971E-10 : f32
      %21 = vector.broadcast %cst_16 : f32 to vector<2x1xf32>
      %22 = arith.maximumf %20, %21 : vector<2x1xf32>
      %c0_17 = arith.constant 0 : index
      %c0_18 = arith.constant 0 : index
      %23 = vector.load %arg7[%c0_17, %c0_18] : memref<2x128xf32, #tpu.memory_space<vmem>>, vector<2x128xf32>
      %24 = vector.broadcast %22 : vector<2x1xf32> to vector<2x128xf32>
      %25 = arith.divf %23, %24 : vector<2x128xf32>
      %c0_19 = arith.constant 0 : index
      %c0_20 = arith.constant 0 : index
      %26 = vector.load %arg6[%c0_19, %c0_20] : memref<2x128xf32, #tpu.memory_space<vmem>>, vector<2x128xf32>
      tpu.vector_store %arg6[%c0_19, %c0_20], %25 {strides = array<i32>} : memref<2x128xf32, #tpu.memory_space<vmem>>, vector<2x128xf32>,
    } else {
    }
    return
  }
  func.func @transform_0(%arg0: i32, %arg1: i32, %arg2: i32) -> i32 {
    %c0_i32 = arith.constant 0 : i32
    %c0_i32_0 = arith.constant 0 : i32
    return %c0_i32 : i32
  }
  func.func @transform_1(%arg0: i32, %arg1: i32, %arg2: i32) -> (i32, i32, i32, i32) {
    %c0_i32 = arith.constant 0 : i32
    %c0_i32_0 = arith.constant 0 : i32
    return %arg2, %arg0, %c0_i32, %arg1 : i32, i32, i32, i32
  }
  func.func @transform_2(%arg0: i32, %arg1: i32, %arg2: i32) -> (i32, i32, i32) {
    %c0_i32 = arith.constant 0 : i32
    %c0_i32_0 = arith.constant 0 : i32
    %c0_i32_1 = arith.constant 0 : i32
    return %arg0, %c0_i32, %c0_i32_0 : i32, i32, i32
  }
  func.func @transform_3(%arg0: i32, %arg1: i32, %arg2: i32) -> (i32, i32) {
    %c0_i32 = arith.constant 0 : i32
    return %arg0, %arg1 : i32, i32
  }
}

</mosaic_0001>

<bundles_post_ra>
// kernel: tpu_custom_call.1
= control target key start
LH: loop header
LB: loop body
LE: loop exit
PB: predicated region body
PF: predicated region fallthrough
CT: control target
= control target key end

     0   :  { %8 = vsyncpa [#allocation6], 0  ;;  %s844_s0 = inlined_call_operand.vmem [shape: f32[4], index: 0, kind: input, shape index: {}]   ;;  %s845_s1 = inlined_call_operand.hbm [shape: f32[4,2,8,128], index: 1, kind: input, shape index: {}]   ;;  %s846_s2 = inlined_call_operand.vmem [shape: f32[2,8,1], index: 2, kind: input, shape index: {}]   ;;  %s847_s3 = inlined_call_operand.hbm [shape: f32[2,128], index: 3, kind: output, shape index: {}]  }
   0x1   :  { %9 = vsyncpa [#allocation4], 0 }
   0x2   :  { %11 = vsyncpa [#allocation4 + $0x1], 0 }
   0x3   :  { %12 = vsyncpa [#allocation5], 0  ;;  %s712_s12 = smov 0   ;;  %s714_s13 = smov 0  }
   0x4   :  { %s716_s14 = smov 0   ;;  %s718_s15 = smov 0  }
   0x5   :  { %s720_s16 = smov 0   ;;  %s722_s17 = smov 0  }
   0x6 LB: > { %s452_s18 = sadd.s32 4294967295, %s683_s17   ;;  %s69_s19 = sadd.s32 1, %s671_s14  ;;  %s683_s17 = sphi %s722_s17, %s18_s17   ;;  %s679_s16 = sphi %s720_s16, %s857_s16   ;;  %s675_s15 = sphi %s718_s15, %s856_s15   ;;  %s671_s14 = sphi %s716_s14, %s855_s14   ;;  %s667_s13 = sphi %s714_s13, %s854_s13   ;;  %s663_s12 = sphi %s712_s12, %s853_s12  }
   0x7   : > { %p76_p0 = scmp.ne.s32.totalorder %s671_s14, %s667_s13  ;;  %p77_p1 = scmp.eq.s32.totalorder %s683_s17, 0 }
   0x8   : > { %p82_p2 = scmp.ne.s32.totalorder %s667_s13, %s663_s12  ;;  %p748_p3 = scmp.eq.s32.totalorder %s452_s18, 0 }
   0x9   : > { %p78_p4 = por %p77_p1, %p76_p0  ;;  %p453_p5 = scmp.ge.s32.totalorder %s683_s17, 1 }
   0xa   : > { %p755_p6 = por %p748_p3, %p82_p2  ;;  %p147_p7 = scmp.lt.s32.totalorder %s683_s17, 5 }
   0xb   : > { %s159_s24 = sshll.u32 %s844_s0, 4  ;;  %p489_p10 = scmp.lt.s32.totalorder %s683_s17, 4  ;;  %s160_s24 = int_to_ptr.vmem [resolvable:$true] %s159_s24 }
   0xc   : > { %p763_p8 = pnand %p453_p5, %p147_p7  ;;  %s179_s26 = sand.u32 1, %s671_s14  }
   0xd   : > { %p773_p12 = pnand %p489_p10, %p78_p4  ;;  %s685_s28 = smov [#allocation3]  }
   0xe   : > { %p480_p9 = pneg %p763_p8  ;;  %s30_s29 = sadd.s32 1, %s679_s16 }
   0xf   : > { %s457_s30 = sshll.u32 %s179_s26, 4  ;;  %p31_p13 = scmp.ge.s32.totalorder %s30_s29, 4 }
  0x10   : > { %p481_p11 = pnand %p480_p9, %p748_p3  ;;  %s469_s4 = sshll.u32 %s679_s16, 4 }
  0x11   : > { %s183_s5 = scalar_lea.vmem [#allocation7], %s457_s30  ;;  %s859_s29 = smov (%p31_p13, %s30_s29), 0 }
  0x12   : > { %483 = dma.vmem_to_smem (!%p481_p11), %s160_s24, 16, %s685_s28, [#allocation6]  }
  0x13   : > { %s194_s6 = sshll.u32 %s183_s5, 4  ;;  %s191_s9 = scalar_lea.hbm %s845_s1, %s469_s4  ;;  %s195_s6 = int_to_ptr.vmem [resolvable:$true] %s194_s6 }
  0x14   : > { %s62_s10 = ssub.s32 %s679_s16, %s859_s29  ;;  %s192_s11 = sshll.u32 %s191_s9, 4  ;;  %s193_s11 = int_to_ptr.hbm [resolvable:$true] %s192_s11 }
  0x15   : > { %p67_p0 = scmp.eq.s32.totalorder %s62_s10, 0  ;;  %s180_s22 = scalar_lea.sflag [#allocation4], %s179_s26 }
  0x16   : > { %s686_s23 = smov 128   ;;  %s687_s24 = smov 8  }
  0x17   : > { %s789_s12 = scalar_select %p67_p0, %s671_s14, %s69_s19  }
  0x18   : > { %487 = dma.hbm_to_vmem [thread:$0]  (!%p773_p12), %s193_s11, 256, %s195_s6, %s180_s22, %s686_s23, %s686_s23, %s687_s24  }
  0x19   : > { %206 = sbr.rel (%p763_p8) target bundleno = 357 (0x165), region = 32 }
  0x1e   : > { %650 = dma.done.wait (%p748_p3), [#allocation6], 16  }
  0x1f   : > { %652 = vsyncadd (%p748_p3), [#allocation6], 4294967280  ;;  %s213_s28 = sand.u32 1, %s667_s13  }
  0x20   : > { %s462_s30 = sshll.u32 %s213_s28, 4  ;;  %s214_s19 = scalar_lea.sflag [#allocation4], %s213_s28 }
  0x21   : > { %s217_s4 = scalar_lea.vmem [#allocation7], %s462_s30 }
  0x22   : > { %654 = dma.done.wait (%p755_p6), %s214_s19, 256  }
  0x23   : > { %656 = vsyncadd (%p755_p6), %s214_s19, 4294967040 }
  0x24   : > { %223 = sfence }
  0x25   : > { %p463_p1 = scmp.ne.s32.totalorder %s675_s15, 0 }
  0x27   : > { %252 = sbr.rel (%p463_p1) target bundleno = 46 (0x2e), region = 44 }
  0x2c   : > { %v688_v0 = vmov 0.0  }
  0x2d   : > { %253 = vst [vmem:[#allocation2] sm:$0x3] %v688_v0 }
  0x2e PF: > { %v257_v1 = vld [vmem:[%s846_s2] sm:$0xff]  ;;  %v689_v2 = vmov 0   ;;  %v258_v3 = vld [vmem:[%s846_s2 + $0x8] sm:$0xff]  ;;  %s254_s21 = sld [smem:[#allocation3 + %s675_s15]]  ;;  %vm289_vm0 = vcmask 1041409   ;;  %p464_p2 = scmp.ne.s32.totalorder %s675_s15, 3 }
  0x2f   : > { %548 = vset.pattern.permute.xlu0 %v689_v2  ;;  %v255_v4 = vld [vmem:[%s217_s4] sm:$0xff]  ;;  %v256_v9 = vld [vmem:[%s217_s4 + $0x8] sm:$0xff] }
  0x30   : > { %262 = vperm.xlu0 %548, %v257_v1  }
  0x34   : > { %v284_v21 = vstv %s254_s21  ;;  %v259_v24 = vld [vmem:[#allocation2] sm:$0x3] }
  0x38   : > { %267 = vperm.xlu0 %548, %v258_v3  }
  0xa2   : > { %v263_v5 = vpop.permute.xlu0 %262 }
  0xa3   : > { %v270_v6 = vmul.f32 %v263_v5, %v255_v4 }
  0xa5   : > { %v272_v7 = vrot.slane %v270_v6, 4 }
  0xa7   : > { %v273_v8 = vadd.f32 %v272_v7, %v270_v6 }
  0xa9   : > { %v274_v10 = vrot.slane %v273_v8, 2 }
  0xaa   : > { %v268_v11 = vpop.permute.xlu0 %267 }
  0xab   : > { %v271_v12 = vmul.f32 %v268_v11, %v256_v9  ;;  %v275_v13 = vadd.f32 %v274_v10, %v273_v8 }
  0xad   : > { %v278_v14 = vrot.slane %v271_v12, 4  ;;  %v276_v16 = vrot.slane %v275_v13, 1 }
  0xaf   : > { %v279_v15 = vadd.f32 %v278_v14, %v271_v12  ;;  %v277_v19 = vadd.f32 %v276_v16, %v275_v13 }
  0xb1   : > { %v280_v17 = vrot.slane %v279_v15, 2  ;;  %v285_v23 = vmul.f32 %v284_v21, %v277_v19 }
  0xb3   : > { %v281_v18 = vadd.f32 %v280_v17, %v279_v15 }
  0xb5   : > { %v282_v20 = vrot.slane %v281_v18, 1 }
  0xb7   : > { %v283_v22 = vadd.f32 %v282_v20, %v281_v18 }
  0xb9   : > { %v286_v25 = vmul.f32 %v284_v21, %v283_v22 }
  0xba   : > { %297 = sbr.rel (%p464_p2) target bundleno = 351 (0x15f), region = 48 }
  0xbb   : > { %v290_v26 = vsel %vm289_vm0, %v286_v25, %v285_v23 }
  0xbc   : > { %v292_v27 = vadd.f32 %v290_v26, %v259_v24 }
  0xbe   : > { %293 = vst [vmem:[#allocation2] sm:$0x3] %v292_v27 }
  0xbf   : > { %v298_v28 = vld [vmem:[%s846_s2] sm:$0xff]  ;;  %v299_v29 = vld [vmem:[%s846_s2 + $0x8] sm:$0xff]  ;;  %vm300_vm1 = vcmask 7168   ;;  %v690_v30 = vmov 0  }
  0xc0   : > { %549 = vset.pattern.permute.xlu0 %v690_v30  ;;  %v301_v31 = vsel %vm300_vm1, %v298_v28, 0.0  ;;  %v308_v32 = vsel %vm300_vm1, %v299_v29, 0.0 }
  0xc1   : > { %v302_v33 = vrot.slane %v301_v31, 4  ;;  %v309_v34 = vrot.slane %v308_v32, 4 }
  0xc3   : > { %v303_v35 = vadd.f32 %v302_v33, %v301_v31  ;;  %v310_v36 = vadd.f32 %v309_v34, %v308_v32 }
  0xc5   : > { %v304_v37 = vrot.slane %v303_v35, 2  ;;  %v311_v38 = vrot.slane %v310_v36, 2  ;;  %v317_v57 = vld [vmem:[#allocation2] sm:$0x3] }
  0xc7   : > { %v305_v39 = vadd.f32 %v304_v37, %v303_v35  ;;  %v312_v40 = vadd.f32 %v311_v38, %v310_v36 }
  0xc9   : > { %v306_v41 = vrot.slane %v305_v39, 1  ;;  %v313_v43 = vrot.slane %v312_v40, 1 }
  0xcb   : > { %v307_v42 = vadd.f32 %v306_v41, %v305_v39  ;;  %v314_v45 = vadd.f32 %v313_v43, %v312_v40 }
  0xcd   : > { %v315_v44 = vmax.f32 %v307_v42, 1e-09  ;;  %v316_v46 = vmax.f32 %v314_v45, 1e-09 }
  0xcf   : > { %320 = vperm.xlu0 %549, %v315_v44  }
  0xd7   : > { %324 = vperm.xlu0 %549, %v316_v46  }
 0x141   : > { %v321_v47 = vpop.permute.xlu0 %320 }
 0x149   : > { %v325_v48 = vpop.permute.xlu0 %324 }
 0x14a   : > { %v326_v49 = vsel %vm289_vm0, %v325_v48, %v321_v47 }
 0x14b   : > { %550 = vrcp.f32 %v326_v49  ;;  %v339_v53 = vand.u32 2147483648, %v326_v49  ;;  %v337_v55 = vand.u32 2147483647, %v326_v49  ;;  %vm333_vm3 = vweird.f32 %v326_v49 }
 0x14d   : > { %v340_v58 = vor.u32 1.1754944e-38, %v339_v53  ;;  %vm338_vm5 = vcmp.eq.f32.partialorder %v337_v55, 8.507059e+37 }
 0x151   : > { %v551_v50 = vpop.eup %550 }
 0x152   : > { %v329_v51 = vmul.f32 %v551_v50, %v326_v49  ;;  %vm334_vm2 = vweird.f32 %v551_v50 }
 0x153   : > { %vm335_vm4 = vmor %vm333_vm3, %vm334_vm2 }
 0x154   : > { %v330_v52 = vsub.f32 1.0, %v329_v51 }
 0x156   : > { %v331_v54 = vmul.f32 %v551_v50, %v330_v52 }
 0x158   : > { %v332_v56 = vadd.f32 %v551_v50, %v331_v54 }
 0x15a   : > { %v336_v59 = vsel %vm335_vm4, %v551_v50, %v332_v56 }
 0x15b   : > { %v341_v60 = vsel %vm338_vm5, %v340_v58, %v336_v59 }
 0x15c   : > { %v342_v61 = vmul.f32 %v341_v60, %v317_v57 }
 0x15e   : > { %343 = vst [vmem:[#allocation8] sm:$0x3] %v342_v61 }
 0x15f PF: > { %p491_p3 = scmp.eq.s32.totalorder %s452_s18, 3  ;;  %s355_s10 = sshll.u32 %s847_s3, 4  ;;  %s356_s10 = int_to_ptr.hbm [resolvable:$true] %s355_s10 }
 0x160   : > { %s691_s11 = smov [#allocation8]  }
 0x161   : > { %s353_s22 = sshll.u32 %s691_s11, 4  ;;  %s354_s22 = int_to_ptr.vmem [resolvable:$true] %s353_s22 }
 0x162   : > { %477 = dma.vmem_to_hbm [thread:$0]  (%p491_p3), %s354_s22, 32, %s356_s10, [#allocation5]  }
 0x163   : > { %658 = dma.done.wait (%p491_p3), [#allocation5], 32  }
 0x164   : > { %660 = vsyncadd (%p491_p3), [#allocation5], 4294967264 }
 0x165 PF: > { %s18_s17 = sadd.s32 1, %s683_s17   ;;  %s852_s23 = smov %s789_s12 }
 0x166   : > { %p15_p4 = scmp.ge.s32.totalorder %s18_s17, 6   ;;  %s853_s12 = smov %s667_s13 }
 0x167   : > { %s854_s13 = smov %s671_s14  ;;  %s855_s14 = smov %s852_s23 }
 0x168   : > { %s856_s15 = smov %s679_s16  ;;  %s857_s16 = smov %s859_s29 }
 0x169   :  { %17 = sbr.rel (!%p15_p4) target bundleno = 6 (0x6), region = 86 }
 0x16e   :  { %369 = vsyncpa [#allocation4], 1 }
 0x16f   :  { %371 = vsyncpa [#allocation4 + $0x1], 1 }
 0x170   :  { %372 = vsyncpa [#allocation5], 1 }
 0x171   :  { %374 = vsyncpa [#allocation5 + $0x1], 1 }
 0x172   :  { %375 = vsyncpa [#allocation6], 1 }
 0x173   :  { %377 = vsyncpa [#allocation6 + $0x1], 1 }

</bundles_post_ra>
